<compile_context>
chip_gen: v6e
topology: v6e:2x2x1
jax: 0.10.0
libtpu: 0.0.40
codegen_flags: <defaults>
</compile_context>

<pallas_src>
import jax
import jax.numpy as jnp
from jax.experimental import pallas as pl
from jax.experimental.pallas import tpu as pltpu


# ---------------------------------------------------------------------------
# Primary (zero data movement) forward: output aliases input.
# ---------------------------------------------------------------------------
def _alias_identity_kernel(x_hbm_ref, o_hbm_ref, flag_ref):
    # forward() is `return x`; the output buffer *is* the input buffer
    # (input_output_aliases={0: 0}), so there is nothing to DMA or compute.
    # The SMEM write below only gives Mosaic a non-empty body to lower.
    del x_hbm_ref, o_hbm_ref
    flag_ref[0] = jnp.int32(1)


def pointnet_forward(x, params=None):
    """PointNet.forward (identity) with zero HBM round trip.

    Output aliases the input HBM buffer; under jit with buffer donation this
    is completely free, otherwise XLA inserts at most one plain copy.
    """
    del params  # forward() never touches the parameters
    return pl.pallas_call(
        _alias_identity_kernel,
        out_shape=jax.ShapeDtypeStruct(x.shape, x.dtype),
        in_specs=[pl.BlockSpec(memory_space=pl.ANY)],   # raw HBM ref, no auto-DMA
        out_specs=pl.BlockSpec(memory_space=pl.ANY),    # raw HBM ref, no auto-DMA
        scratch_shapes=[pltpu.SMEM((1,), jnp.int32)],
        input_output_aliases={0: 0},
    )(x)


# ---------------------------------------------------------------------------
# Secondary path: materialized copy (only when aliasing is not allowed).
# ---------------------------------------------------------------------------
_LANES = 128        # full vreg lane width -> unmasked vst, dense DMA descriptors
_TILE_ROWS = 1024   # 1024 x 128 f32 = 512 KiB/block; 2x-buffered in+out ~ 2 MiB


def _copy_kernel(x_ref, o_ref):
    o_ref[...] = x_ref[...]


def pointnet_forward_copy(x, params=None):
    """Identity forward that materializes a fresh output buffer (tiled copy)."""
    del params
    total = x.size
    if total % _LANES != 0:
        # Odd/tiny shapes: single whole-array block (block == full array dims).
        return pl.pallas_call(
            _copy_kernel,
            out_shape=jax.ShapeDtypeStruct(x.shape, x.dtype),
            in_specs=[pl.BlockSpec(x.shape, lambda: (0,) * x.ndim)],
            out_specs=pl.BlockSpec(x.shape, lambda: (0,) * x.ndim),
        )(x)

    rows = total // _LANES
    tile_rows = _TILE_ROWS if rows >= _TILE_ROWS else rows  # full dim when small
    x2 = x.reshape(rows, _LANES)                            # lane/sublane-dense slab
    grid = (pl.cdiv(rows, tile_rows),)

    out2 = pl.pallas_call(
        _copy_kernel,
        out_shape=jax.ShapeDtypeStruct((rows, _LANES), x.dtype),
        grid=grid,
        in_specs=[pl.BlockSpec((tile_rows, _LANES), lambda i: (i, 0))],
        out_specs=pl.BlockSpec((tile_rows, _LANES), lambda i: (i, 0)),
        compiler_params=pltpu.CompilerParams(
            dimension_semantics=("parallel",),        # v7x: split across 2 TCs
            vmem_limit_bytes=32 * 1024 * 1024,        # explicit budget (v7x-safe)
        ),
        cost_estimate=pl.CostEstimate(
            flops=0, transcendentals=0,
            bytes_accessed=2 * total * x.dtype.itemsize),
    )(x2)
    return out2.reshape(x.shape)


# ---------------------------------------------------------------------------
# Parameter init — shape fidelity with PointNet.__init__ (unused by forward).
# ---------------------------------------------------------------------------
def init_pointnet_params(key):
    ks = jax.random.split(key, 6)

    def u(k, shape, fan_in):
        bound = 1.0 / jnp.sqrt(fan_in)
        return jax.random.uniform(k, shape, jnp.float32, -bound, bound)

    params = {
        # Conv1d(in, out, kernel_size=1): weight (out, in, 1), bias (out,)
        "conv1_w": u(ks[0], (64, 3, 1), 3), "conv1_b": jnp.zeros((64,), jnp.float32),
        "conv2_w": u(ks[1], (128, 64, 1), 64), "conv2_b": jnp.zeros((128,), jnp.float32),
        "conv3_w": u(ks[2], (1024, 128, 1), 128), "conv3_b": jnp.zeros((1024,), jnp.float32),
        # Linear(in, out): weight (out, in), bias (out,)
        "fc1_w": u(ks[3], (512, 1024), 1024), "fc1_b": jnp.zeros((512,), jnp.float32),
        "fc2_w": u(ks[4], (256, 512), 512), "fc2_b": jnp.zeros((256,), jnp.float32),
        "fc3_w": u(ks[5], (40, 256), 256), "fc3_b": jnp.zeros((40,), jnp.float32),
        # BatchNorm1d(C): gamma=1, beta=0
        **{f"bn{i}_gamma": jnp.ones((c,), jnp.float32)
           for i, c in zip(range(1, 6), (64, 128, 1024, 512, 256))},
        **{f"bn{i}_beta": jnp.zeros((c,), jnp.float32)
           for i, c in zip(range(1, 6), (64, 128, 1024, 512, 256))},
    }
    return params


if __name__ == "__main__":
    key = jax.random.PRNGKey(0)
    k_x, k_x2, k_p = jax.random.split(key, 3)

    # Small input in nn.Conv1d's NCW layout: batch=2, channels=3 (xyz), 2048 pts.
    x_small = jax.random.normal(k_x, (2, 3, 2048), dtype=jnp.float32)
    params = init_pointnet_params(k_p)  # declared-but-unused, matching the module

    # 1) Zero-copy aliased forward (the real PointNet.forward).
    out = jax.block_until_ready(pointnet_forward(x_small, params))
    assert out.shape == x_small.shape and out.dtype == x_small.dtype
    assert bool(jnp.array_equal(out, x_small))

    # 2) Tiled, pipelined copy path: 2*3*65536/128 = 3072 rows -> grid of 3
    #    (1024, 128) blocks, evenly divided (no masked partial stores).
    x_big = jax.random.normal(k_x2, (2, 3, 65536), dtype=jnp.float32)
    out_big = jax.block_until_ready(pointnet_forward_copy(x_big))
    assert bool(jnp.array_equal(out_big, x_big))

    # 3) Copy path also handles small shapes (single full-array block).
    out_small = jax.block_until_ready(pointnet_forward_copy(x_small))
    assert bool(jnp.array_equal(out_small, x_small))

    print("KERNEL_OK")
</pallas_src>

<mosaic_0001>
module attributes {stable_mosaic.version = 11 : i64} {
  func.func @_alias_identity_kernel(%arg0: memref<2x3x2048xf32, #tpu.memory_space<any>>, %arg1: memref<2x3x2048xf32, #tpu.memory_space<any>>, %arg2: memref<1xi32, #tpu.memory_space<smem>>) attributes {dimension_semantics = [], scalar_prefetch = 0 : i64, scratch_operands = 1 : i64, tpu.core_type = #tpu.core_type<tc>} {
    %c1_i32 = arith.constant 1 : i32
    %c0 = arith.constant 0 : index
    %0 = memref.load %arg2[%c0] : memref<1xi32, #tpu.memory_space<smem>>
    memref.store %c1_i32, %arg2[%c0] : memref<1xi32, #tpu.memory_space<smem>>
    return
  }
}

</mosaic_0001>

<bundles_post_ra>
// kernel: tpu_custom_call.1
= control target key start
LH: loop header
LB: loop body
LE: loop exit
PB: predicated region body
PF: predicated region fallthrough
CT: control target
= control target key end

     0   :  { %s18_s0 = inlined_call_operand.vmem [shape: f32[2,3,2048], index: 0, kind: input, shape index: {}, may-alias: {0,1}]   ;;  %s19_s1 = inlined_call_operand.vmem [shape: f32[2,3,2048], index: 1, kind: output, shape index: {}, may-alias: {0,1}]  }

</bundles_post_ra>
